<compile_context>
chip_gen: v7x
topology: tpu7x:2x2x1
jax: 0.10.0
libtpu: 0.0.40
codegen_flags: <defaults>
</compile_context>

<pallas_src>
import jax
import jax.numpy as jnp
from jax.experimental import pallas as pl
from jax.experimental.pallas import tpu as pltpu


def _elu(v):
    # ELU with alpha=1.0 (PyTorch default).  exp only ever sees non-positive
    # arguments: no wasted EUP work on the discarded positive branch and no
    # NaN gradients / reduced-precision overflow through the dead branch.
    return jnp.where(v > 0, v, jnp.exp(jnp.minimum(v, 0.0)) - 1.0)


def mlp_conv_kernel(x_ref, w1_ref, b1_ref, w2_ref, b2_ref, w3_ref, b3_ref,
                    wo_ref, bo_ref, o_ref):
    # x_ref block: (1, C_in, TL) -- channels on sublanes, positions on lanes.
    x = x_ref[0]                                                   # (C_in, TL)
    h = _elu(jnp.dot(w1_ref[...], x, preferred_element_type=jnp.float32)
             + b1_ref[...])                                        # (m0, TL)
    h = _elu(jnp.dot(w2_ref[...], h, preferred_element_type=jnp.float32)
             + b2_ref[...])                                        # (m1, TL)
    h = _elu(jnp.dot(w3_ref[...], h, preferred_element_type=jnp.float32)
             + b3_ref[...])                                        # (m2, TL)
    o_ref[0] = (jnp.dot(wo_ref[...], h, preferred_element_type=jnp.float32)
                + bo_ref[...])                                     # (out, TL)


def _pick_tile(L, max_tile=2048):
    """Lane tile over L: full L when small, else a 128-multiple divisor.

    max_tile=2048 keeps 2x double-buffered (in + out) tiles well under the
    v7x 64 MiB VMEM / 32 MiB default scoped limit.
    """
    if L <= max_tile:
        return L
    for t in (2048, 1024, 512, 256, 128):
        if L % t == 0:
            return t
    return L


def model_forward(x_ncl, params):
    """x_ncl: (N, C_in, L) float32.  Returns (N, out_size, L) float32."""
    w1, b1, w2, b2, w3, b3, wo, bo = params
    N, C_in, L = x_ncl.shape
    out_size = wo.shape[0]
    m0, m1, m2 = w1.shape[0], w2.shape[0], w3.shape[0]

    TL = _pick_tile(L)
    grid = (N, pl.cdiv(L, TL))

    x_spec = pl.BlockSpec((1, C_in, TL), lambda n, l: (n, 0, l))
    o_spec = pl.BlockSpec((1, out_size, TL), lambda n, l: (n, 0, l))
    # Weights / biases: full-array blocks that never change -> VMEM-resident.
    resident = lambda a: pl.BlockSpec(a.shape, lambda n, l: (0, 0))

    M = N * L
    cost = pl.CostEstimate(
        flops=2 * M * (C_in * m0 + m0 * m1 + m1 * m2 + m2 * out_size),
        transcendentals=M * (m0 + m1 + m2),
        bytes_accessed=4 * M * (C_in + out_size)
        + 4 * sum(int(p.size) for p in params),
    )

    return pl.pallas_call(
        mlp_conv_kernel,
        out_shape=jax.ShapeDtypeStruct((N, out_size, L), jnp.float32),
        grid=grid,
        in_specs=[
            x_spec,
            resident(w1), resident(b1),
            resident(w2), resident(b2),
            resident(w3), resident(b3),
            resident(wo), resident(bo),
        ],
        out_specs=o_spec,
        compiler_params=pltpu.CompilerParams(
            dimension_semantics=("parallel", "parallel")),
        cost_estimate=cost,
    )(x_ncl, w1, b1, w2, b2, w3, b3, wo, bo)


def init_params(key, in_channels=20, mid_channels=(20, 10, 10), out_size=10):
    """PyTorch-style uniform(-1/sqrt(fan_in), 1/sqrt(fan_in)) init.

    Weights are stored as (C_out, C_in) (conv1d k=1 layout) and biases as
    (C_out, 1) so the in-kernel bias add is a sublane broadcast.
    """
    dims = [in_channels, mid_channels[0], mid_channels[1], mid_channels[2],
            out_size]
    params = []
    keys = jax.random.split(key, 2 * (len(dims) - 1))
    for li in range(len(dims) - 1):
        fan_in, fan_out = dims[li], dims[li + 1]
        bound = 1.0 / jnp.sqrt(jnp.float32(fan_in))
        w = jax.random.uniform(keys[2 * li], (fan_out, fan_in),
                               minval=-bound, maxval=bound, dtype=jnp.float32)
        b = jax.random.uniform(keys[2 * li + 1], (fan_out, 1),
                               minval=-bound, maxval=bound, dtype=jnp.float32)
        params.extend([w, b])
    return tuple(params)


def reference_forward(x_ncl, params):
    w1, b1, w2, b2, w3, b3, wo, bo = params

    def layer(h, w, b):
        return jnp.einsum('oc,ncl->nol', w, h) + b[None]

    h = _elu(layer(x_ncl, w1, b1))
    h = _elu(layer(h, w2, b2))
    h = _elu(layer(h, w3, b3))
    return layer(h, wo, bo)


if __name__ == "__main__":
    key = jax.random.PRNGKey(0)
    k_x, k_p = jax.random.split(key)

    N, C_in, L = 2, 20, 16
    out_size = 10
    x = jax.random.normal(k_x, (N, C_in, L), dtype=jnp.float32)
    params = init_params(k_p, in_channels=C_in,
                         mid_channels=(20, 10, 10), out_size=out_size)

    out = model_forward(x, params)
    jax.block_until_ready(out)

    ref = reference_forward(x, params)
    assert out.shape == (N, out_size, L)
    assert jnp.allclose(out, ref, atol=1e-5, rtol=1e-5)

    print("KERNEL_OK")
</pallas_src>

<mosaic_0001>
module attributes {stable_mosaic.version = 11 : i64} {
  func.func @mlp_conv_kernel(%arg0: i32, %arg1: i32, %arg2: memref<1x20x16xf32, #tpu.memory_space<vmem>>, %arg3: memref<20x20xf32, #tpu.memory_space<vmem>>, %arg4: memref<20x1xf32, #tpu.memory_space<vmem>>, %arg5: memref<10x20xf32, #tpu.memory_space<vmem>>, %arg6: memref<10x1xf32, #tpu.memory_space<vmem>>, %arg7: memref<10x10xf32, #tpu.memory_space<vmem>>, %arg8: memref<10x1xf32, #tpu.memory_space<vmem>>, %arg9: memref<10x10xf32, #tpu.memory_space<vmem>>, %arg10: memref<10x1xf32, #tpu.memory_space<vmem>>, %arg11: memref<1x10x16xf32, #tpu.memory_space<vmem>>) attributes {dimension_semantics = [#tpu.dimension_semantics<parallel>, #tpu.dimension_semantics<parallel>], iteration_bounds = array<i64: 2, 1>, scalar_prefetch = 0 : i64, scratch_operands = 0 : i64, tpu.core_type = #tpu.core_type<tc>, window_params = [{transform_indices = @transform_0, window_bounds = array<i64: 1, 20, 16>}, {pipeline_mode = #tpu.pipeline_mode<synchronous>, transform_indices = @transform_1, window_bounds = array<i64: 20, 20>}, {pipeline_mode = #tpu.pipeline_mode<synchronous>, transform_indices = @transform_2, window_bounds = array<i64: 20, 1>}, {pipeline_mode = #tpu.pipeline_mode<synchronous>, transform_indices = @transform_3, window_bounds = array<i64: 10, 20>}, {pipeline_mode = #tpu.pipeline_mode<synchronous>, transform_indices = @transform_4, window_bounds = array<i64: 10, 1>}, {pipeline_mode = #tpu.pipeline_mode<synchronous>, transform_indices = @transform_5, window_bounds = array<i64: 10, 10>}, {pipeline_mode = #tpu.pipeline_mode<synchronous>, transform_indices = @transform_6, window_bounds = array<i64: 10, 1>}, {pipeline_mode = #tpu.pipeline_mode<synchronous>, transform_indices = @transform_7, window_bounds = array<i64: 10, 10>}, {pipeline_mode = #tpu.pipeline_mode<synchronous>, transform_indices = @transform_8, window_bounds = array<i64: 10, 1>}, {transform_indices = @transform_9, window_bounds = array<i64: 1, 10, 16>}]} {
    %c0 = arith.constant 0 : index
    %c0_0 = arith.constant 0 : index
    %c0_1 = arith.constant 0 : index
    %0 = vector.load %arg2[%c0, %c0_0, %c0_1] : memref<1x20x16xf32, #tpu.memory_space<vmem>>, vector<1x20x16xf32>
    %1 = vector.shape_cast %0 : vector<1x20x16xf32> to vector<20x16xf32>
    %c0_2 = arith.constant 0 : index
    %c0_3 = arith.constant 0 : index
    %2 = vector.load %arg3[%c0_2, %c0_3] : memref<20x20xf32, #tpu.memory_space<vmem>>, vector<20x20xf32>
    %cst = arith.constant dense<0.000000e+00> : vector<20x16xf32>
    %3 = tpu.matmul %2, %1, %cst {dimension_numbers = #tpu.dot_dimension_numbers<[1], [0], [0], [1], [0, 0, 1, 1], [], []>} : vector<20x20xf32>, vector<20x16xf32>, vector<20x16xf32> -> vector<20x16xf32>
    %c0_4 = arith.constant 0 : index
    %c0_5 = arith.constant 0 : index
    %4 = vector.load %arg4[%c0_4, %c0_5] : memref<20x1xf32, #tpu.memory_space<vmem>>, vector<20x1xf32>
    %5 = vector.broadcast %4 : vector<20x1xf32> to vector<20x16xf32>
    %6 = arith.addf %3, %5 : vector<20x16xf32>
    %cst_6 = arith.constant 0.000000e+00 : f32
    %7 = vector.broadcast %cst_6 : f32 to vector<20x16xf32>
    %8 = arith.cmpf ogt, %6, %7 : vector<20x16xf32>
    %cst_7 = arith.constant 0.000000e+00 : f32
    %9 = vector.broadcast %cst_7 : f32 to vector<20x16xf32>
    %10 = arith.minimumf %6, %9 : vector<20x16xf32>
    %11 = math.exp %10 : vector<20x16xf32>
    %cst_8 = arith.constant 1.000000e+00 : f32
    %12 = vector.broadcast %cst_8 : f32 to vector<20x16xf32>
    %13 = arith.subf %11, %12 : vector<20x16xf32>
    %14 = arith.select %8, %6, %13 : vector<20x16xi1>, vector<20x16xf32>
    %c0_9 = arith.constant 0 : index
    %c0_10 = arith.constant 0 : index
    %15 = vector.load %arg5[%c0_9, %c0_10] : memref<10x20xf32, #tpu.memory_space<vmem>>, vector<10x20xf32>
    %cst_11 = arith.constant dense<0.000000e+00> : vector<10x16xf32>
    %16 = tpu.matmul %15, %14, %cst_11 {dimension_numbers = #tpu.dot_dimension_numbers<[1], [0], [0], [1], [0, 0, 1, 1], [], []>} : vector<10x20xf32>, vector<20x16xf32>, vector<10x16xf32> -> vector<10x16xf32>
    %c0_12 = arith.constant 0 : index
    %c0_13 = arith.constant 0 : index
    %17 = vector.load %arg6[%c0_12, %c0_13] : memref<10x1xf32, #tpu.memory_space<vmem>>, vector<10x1xf32>
    %18 = vector.broadcast %17 : vector<10x1xf32> to vector<10x16xf32>
    %19 = arith.addf %16, %18 : vector<10x16xf32>
    %cst_14 = arith.constant 0.000000e+00 : f32
    %20 = vector.broadcast %cst_14 : f32 to vector<10x16xf32>
    %21 = arith.cmpf ogt, %19, %20 : vector<10x16xf32>
    %cst_15 = arith.constant 0.000000e+00 : f32
    %22 = vector.broadcast %cst_15 : f32 to vector<10x16xf32>
    %23 = arith.minimumf %19, %22 : vector<10x16xf32>
    %24 = math.exp %23 : vector<10x16xf32>
    %cst_16 = arith.constant 1.000000e+00 : f32
    %25 = vector.broadcast %cst_16 : f32 to vector<10x16xf32>
    %26 = arith.subf %24, %25 : vector<10x16xf32>
    %27 = arith.select %21, %19, %26 : vector<10x16xi1>, vector<10x16xf32>
    %c0_17 = arith.constant 0 : index
    %c0_18 = arith.constant 0 : index
    %28 = vector.load %arg7[%c0_17, %c0_18] : memref<10x10xf32, #tpu.memory_space<vmem>>, vector<10x10xf32>
    %cst_19 = arith.constant dense<0.000000e+00> : vector<10x16xf32>
    %29 = tpu.matmul %28, %27, %cst_19 {dimension_numbers = #tpu.dot_dimension_numbers<[1], [0], [0], [1], [0, 0, 1, 1], [], []>} : vector<10x10xf32>, vector<10x16xf32>, vector<10x16xf32> -> vector<10x16xf32>
    %c0_20 = arith.constant 0 : index
    %c0_21 = arith.constant 0 : index
    %30 = vector.load %arg8[%c0_20, %c0_21] : memref<10x1xf32, #tpu.memory_space<vmem>>, vector<10x1xf32>
    %31 = vector.broadcast %30 : vector<10x1xf32> to vector<10x16xf32>
    %32 = arith.addf %29, %31 : vector<10x16xf32>
    %cst_22 = arith.constant 0.000000e+00 : f32
    %33 = vector.broadcast %cst_22 : f32 to vector<10x16xf32>
    %34 = arith.cmpf ogt, %32, %33 : vector<10x16xf32>
    %cst_23 = arith.constant 0.000000e+00 : f32
    %35 = vector.broadcast %cst_23 : f32 to vector<10x16xf32>
    %36 = arith.minimumf %32, %35 : vector<10x16xf32>
    %37 = math.exp %36 : vector<10x16xf32>
    %cst_24 = arith.constant 1.000000e+00 : f32
    %38 = vector.broadcast %cst_24 : f32 to vector<10x16xf32>
    %39 = arith.subf %37, %38 : vector<10x16xf32>
    %40 = arith.select %34, %32, %39 : vector<10x16xi1>, vector<10x16xf32>
    %c0_25 = arith.constant 0 : index
    %c0_26 = arith.constant 0 : index
    %41 = vector.load %arg9[%c0_25, %c0_26] : memref<10x10xf32, #tpu.memory_space<vmem>>, vector<10x10xf32>
    %cst_27 = arith.constant dense<0.000000e+00> : vector<10x16xf32>
    %42 = tpu.matmul %41, %40, %cst_27 {dimension_numbers = #tpu.dot_dimension_numbers<[1], [0], [0], [1], [0, 0, 1, 1], [], []>} : vector<10x10xf32>, vector<10x16xf32>, vector<10x16xf32> -> vector<10x16xf32>
    %c0_28 = arith.constant 0 : index
    %c0_29 = arith.constant 0 : index
    %43 = vector.load %arg10[%c0_28, %c0_29] : memref<10x1xf32, #tpu.memory_space<vmem>>, vector<10x1xf32>
    %44 = vector.broadcast %43 : vector<10x1xf32> to vector<10x16xf32>
    %45 = arith.addf %42, %44 : vector<10x16xf32>
    %c0_30 = arith.constant 0 : index
    %c0_31 = arith.constant 0 : index
    %c0_32 = arith.constant 0 : index
    %46 = vector.load %arg11[%c0_30, %c0_31, %c0_32] : memref<1x10x16xf32, #tpu.memory_space<vmem>>, vector<1x10x16xf32>
    %47 = vector.shape_cast %46 : vector<1x10x16xf32> to vector<10x16xf32>
    %48 = vector.shape_cast %45 : vector<10x16xf32> to vector<1x10x16xf32>
    tpu.vector_store %arg11[%c0_30, %c0_31, %c0_32], %48 {strides = array<i32>} : memref<1x10x16xf32, #tpu.memory_space<vmem>>, vector<1x10x16xf32>,
    return
  }
  func.func @transform_0(%arg0: i32, %arg1: i32) -> (i32, i32, i32) {
    %c0_i32 = arith.constant 0 : i32
    %c0_i32_0 = arith.constant 0 : i32
    return %arg0, %c0_i32, %arg1 : i32, i32, i32
  }
  func.func @transform_1(%arg0: i32, %arg1: i32) -> (i32, i32) {
    %c0_i32 = arith.constant 0 : i32
    %c0_i32_0 = arith.constant 0 : i32
    %c0_i32_1 = arith.constant 0 : i32
    return %c0_i32, %c0_i32_0 : i32, i32
  }
  func.func @transform_2(%arg0: i32, %arg1: i32) -> (i32, i32) {
    %c0_i32 = arith.constant 0 : i32
    %c0_i32_0 = arith.constant 0 : i32
    %c0_i32_1 = arith.constant 0 : i32
    return %c0_i32, %c0_i32_0 : i32, i32
  }
  func.func @transform_3(%arg0: i32, %arg1: i32) -> (i32, i32) {
    %c0_i32 = arith.constant 0 : i32
    %c0_i32_0 = arith.constant 0 : i32
    %c0_i32_1 = arith.constant 0 : i32
    return %c0_i32, %c0_i32_0 : i32, i32
  }
  func.func @transform_4(%arg0: i32, %arg1: i32) -> (i32, i32) {
    %c0_i32 = arith.constant 0 : i32
    %c0_i32_0 = arith.constant 0 : i32
    %c0_i32_1 = arith.constant 0 : i32
    return %c0_i32, %c0_i32_0 : i32, i32
  }
  func.func @transform_5(%arg0: i32, %arg1: i32) -> (i32, i32) {
    %c0_i32 = arith.constant 0 : i32
    %c0_i32_0 = arith.constant 0 : i32
    %c0_i32_1 = arith.constant 0 : i32
    return %c0_i32, %c0_i32_0 : i32, i32
  }
  func.func @transform_6(%arg0: i32, %arg1: i32) -> (i32, i32) {
    %c0_i32 = arith.constant 0 : i32
    %c0_i32_0 = arith.constant 0 : i32
    %c0_i32_1 = arith.constant 0 : i32
    return %c0_i32, %c0_i32_0 : i32, i32
  }
  func.func @transform_7(%arg0: i32, %arg1: i32) -> (i32, i32) {
    %c0_i32 = arith.constant 0 : i32
    %c0_i32_0 = arith.constant 0 : i32
    %c0_i32_1 = arith.constant 0 : i32
    return %c0_i32, %c0_i32_0 : i32, i32
  }
  func.func @transform_8(%arg0: i32, %arg1: i32) -> (i32, i32) {
    %c0_i32 = arith.constant 0 : i32
    %c0_i32_0 = arith.constant 0 : i32
    %c0_i32_1 = arith.constant 0 : i32
    return %c0_i32, %c0_i32_0 : i32, i32
  }
  func.func @transform_9(%arg0: i32, %arg1: i32) -> (i32, i32, i32) {
    %c0_i32 = arith.constant 0 : i32
    %c0_i32_0 = arith.constant 0 : i32
    return %arg0, %c0_i32, %arg1 : i32, i32, i32
  }
}

</mosaic_0001>

<bundles_post_ra>
// kernel: tpu_custom_call.1
= control target key start
LH: loop header
LB: loop body
LE: loop exit
PB: predicated region body
PF: predicated region fallthrough
CT: control target
= control target key end

     0   :  { %s1139_s30 = smov 0   ;;  %s1141_s10 = smov 0   ;;  %s1257_s0 = inlined_call_operand.vmem [shape: f32[2,20,16], index: 0, kind: input, shape index: {}]   ;;  %s1258_s1 = inlined_call_operand.vmem [shape: f32[20,20], index: 1, kind: input, shape index: {}]   ;;  %s1259_s2 = inlined_call_operand.vmem [shape: f32[20,1], index: 2, kind: input, shape index: {}]   ;;  %s1260_s3 = inlined_call_operand.vmem [shape: f32[10,20], index: 3, kind: input, shape index: {}]   ;;  %s1261_s4 = inlined_call_operand.vmem [shape: f32[10,1], index: 4, kind: input, shape index: {}]   ;;  %s1262_s5 = inlined_call_operand.vmem [shape: f32[10,10], index: 5, kind: input, shape index: {}]   ;;  %s1263_s6 = inlined_call_operand.vmem [shape: f32[10,1], index: 6, kind: input, shape index: {}]   ;;  %s1264_s7 = inlined_call_operand.vmem [shape: f32[10,10], index: 7, kind: input, shape index: {}]   ;;  %s1265_s8 = inlined_call_operand.vmem [shape: f32[10,1], index: 8, kind: input, shape index: {}]   ;;  %s1266_s9 = inlined_call_operand.vmem [shape: f32[2,10,16], index: 9, kind: output, shape index: {}]  }
   0x1   :  { %s1143_s11 = smov 0  }
   0x2 LB: > { %s31_s12 = sadd.s32 1, %s1078_s10  ;;  %p911_p0 = scmp.ge.s32.totalorder %s1082_s11, 1  ;;  %s1082_s11 = sphi %s1143_s11, %s19_s11   ;;  %s1078_s10 = sphi %s1141_s10, %s1270_s10   ;;  %s1074_s30 = sphi %s1139_s30, %s1269_s30  }
   0x3   : > { %p33_p1 = scmp.ge.s32.totalorder %s31_s12, 2  ;;  %p306_p2 = scmp.lt.s32.totalorder %s1082_s11, 3 }
   0x5   : > { %s1272_s12 = smov (%p33_p1, %s31_s12), 0  ;;  %p307_p3 = pnand %p911_p0, %p306_p2 }
   0x6   : > { %p348_p4 = scmp.lt.s32.totalorder (!%p307_p3), %s1074_s30, 1  ;;  %v1084_v0 = vmov (!%p307_p3), 0.0|0.0   ;;  %vm1085_vm0 = vmmov (!%p307_p3), 0   ;;  %v1086_v1 = vmov (!%p307_p3), 0.0   ;;  %v370_v2 = vld [vmem:[%s1259_s2] sm:$0xff] (!%p307_p3)  ;;  %v1087_v3 = vmov (!%p307_p3), 0  }
   0x7   : > { %310 = sbr.rel (%p307_p3) target bundleno = 964 (0x3c4), region = 56  ;;  %995 = vmatprep.subr.bf16.mxu0 (!%p307_p3), %v1084_v0  ;;  %963 = vmatprep.mubr.msk.f32.mxu0 (!%p307_p3), %vm1085_vm0, %v1086_v1  ;;  %v372_v4 = vld [vmem:[%s1259_s2 + $0x10] sm:$0xf] (!%p307_p3)  ;;  %v371_v5 = vld [vmem:[%s1259_s2 + $0x8] sm:$0xff] (!%p307_p3)  ;;  %v502_v6 = vld [vmem:[%s1261_s4] sm:$0xff] (!%p307_p3)  ;;  %vm398_vm1 = vcmask (!%p307_p3), 1043456  }
   0x8   : > { %1044 = vset.pattern.permute.xlu0 (!%p307_p3), %v1087_v3  ;;  %1045 = vset.pattern.permute.xlu1 (!%p307_p3), %v1087_v3  ;;  %v503_v10 = vld [vmem:[%s1261_s4 + $0x8] sm:$0x3] (!%p307_p3)  ;;  %v612_v11 = vld [vmem:[%s1263_s6] sm:$0xff] (!%p307_p3)  ;;  %vm388_vm2 = vcmask (!%p307_p3), 162816   ;;  %v369_v18 = vld [vmem:[%s1258_s1 + $0x10] sm:$0xf] (!%p307_p3) }
   0x9   : > { %375 = vperm.xlu0 (!%p307_p3), %1044, %v370_v2   ;;  %385 = vperm.xlu1 (!%p307_p3), %1045, %v372_v4   ;;  %v367_v13 = vld [vmem:[%s1258_s1] sm:$0xff] (!%p307_p3)  ;;  %v613_v14 = vld [vmem:[%s1263_s6 + $0x8] sm:$0x3] (!%p307_p3)  ;;  %vm624_vm6 = vcmask (!%p307_p3), 80896   ;;  %vm631_vm7 = vcmask (!%p307_p3), 1041408   ;;  %vm1088_vm10 = vmmov (!%p307_p3), 1  }
   0xa   : > { %v724_v15 = vld [vmem:[%s1265_s8] sm:$0xff] (!%p307_p3)  ;;  %v368_v16 = vld [vmem:[%s1258_s1 + $0x8] sm:$0xff] (!%p307_p3)  ;;  %vm1220_vm11 = vmpackc.low (!%p307_p3), %vm631_vm7, %vm1088_vm10  ;;  %vm822_vm14 = vcmask (!%p307_p3), 123904   ;;  %vm820_vm15 = vcmask (!%p307_p3), 130048  }
   0xb   : > { %v725_v17 = vld [vmem:[%s1265_s8 + $0x8] sm:$0x3] (!%p307_p3)  ;;  %v500_v19 = vld [vmem:[%s1260_s3] sm:$0xff] (!%p307_p3) }
   0xc   : > { %978 = vmatprep.mubr.msk.f32.mxu1 (!%p307_p3), %vm388_vm2, %v500_v19  ;;  %v501_v48 = vld [vmem:[%s1260_s3 + $0x8] sm:$0x3] (!%p307_p3)  ;;  %v610_v49 = vld [vmem:[%s1262_s5] sm:$0xff] (!%p307_p3) }
   0xd   : > { %380 = vperm.xlu0 (!%p307_p3), %1044, %v371_v5   ;;  %506 = vperm.xlu1 (!%p307_p3), %1045, %v502_v6   ;;  %v611_v4 = vld [vmem:[%s1262_s5 + $0x8] sm:$0x3] (!%p307_p3)  ;;  %v722_v5 = vld [vmem:[%s1264_s7] sm:$0xff] (!%p307_p3) }
   0xe   : > { %s1274_s30 = smov (!%p348_p4, %s1074_s30), 1 }
   0xf   : > { %s1014_s17 = smul.u32 24, %s1274_s30  ;;  %s937_s19 = sshll.u32 %s1274_s30, 4 }
  0x10   : > { %s363_s22 = scalar_lea.vmem %s1266_s9, %s937_s19 }
  0x11   : > { %s355_s24 = scalar_lea.vmem %s1257_s0, %s1014_s17  ;;  %511 = vperm.xlu0 %1044, %v503_v10   ;;  %616 = vperm.xlu1 %1045, %v612_v11  }
  0x12   : > { %v364_v7 = vld [vmem:[%s355_s24] sm:$0xff]  ;;  %v365_v8 = vld [vmem:[%s355_s24 + $0x8] sm:$0xff]  ;;  %v366_v12 = vld [vmem:[%s355_s24 + $0x10] sm:$0xf] }
  0x13   : > { %v996_v9 = vpack.c.bf16 %v365_v8, %v364_v7 }
  0x15   : > { %997 = vmatpush3.bf16.msra.mxu0 %v996_v9  ;;  %621 = vperm.xlu0 %1044, %v613_v14  }
  0x16   : > { %961 = vmatprep.subr.mxu0 %v1086_v1  ;;  %728 = vperm.xlu1 %1045, %v724_v15  }
  0x19   : > { %962 = vmatpush3.msk.msra.mxu0 %vm398_vm1, %v366_v12  ;;  %733 = vperm.xlu0 %1044, %v725_v17  }
  0x1a   : > { %964 = vmatmul.mubr.msk.f32.vlgmr.msra.gmra.mrb[0].mxu0 %vm388_vm2, %v367_v13 }
  0x1b   : > { %966 = vmatprep.mubr.msk.f32.mxu0 %vm1085_vm0, %v1086_v1 }
  0x1e   : > { %967 = vmatmul.mubr.msk.f32.gmra.mrb[2].mxu0 %vm388_vm2, %v368_v16 }
  0x1f   : > { %969 = vmatprep.mubr.msk.f32.mxu0 %vm1085_vm0, %v1086_v1 }
  0x22   : > { %970 = vmatmul.mubr.msk.f32.gmra.mrb[4].mxu0 %vm388_vm2, %v369_v18 }
  0x88   : > { %v376_v20 = vpop.permute.xlu0 %375  ;;  %v386_v31 = vpop.permute.xlu1 %385 }
  0x8c   : > { %v381_v25 = vpop.permute.xlu0 %380  ;;  %v507_v52 = vpop.permute.xlu1 %506 }
  0x90   : > { %v512_v50 = vpop.permute.xlu0 %511  ;;  %v617_v8 = vpop.permute.xlu1 %616 }
  0x94   : > { %v622_v6 = vpop.permute.xlu0 %621 }
  0xed   : > { %v468_v21 = vpop.f32.mrb[0].mxu0 }
  0xee   : > { %v469_v22 = vadd.f32 %v468_v21, %v376_v20  ;;  %v965_v23 = vpop.f32.mrb[1].mxu0 }
  0xef   : > { %v723_v23 = vld [vmem:[%s1264_s7 + $0x8] sm:$0x3] }
  0xf0   : > { %v485_v24 = vmin.f32 %v469_v22, 0.0  ;;  %vm482_vm3 = vcmp.gt.f32.partialorder %v469_v22, 0.0 }
  0xf1   : > { %v473_v26 = vpop.f32.mrb[2].mxu0 }
  0xf2   : > { %v488_v27 = vmul.f32 1.442695, %v485_v24  ;;  %v474_v28 = vadd.f32 %v473_v26, %v381_v25  ;;  %v968_v29 = vpop.f32.mrb[3].mxu0  ;;  %v734_v24 = vpop.permute.xlu0 %733 }
  0xf3   : > { %v729_v26 = vpop.permute.xlu1 %728 }
  0xf4   : > { %1046 = vpow2.f32 %v488_v27  ;;  %v486_v30 = vmin.f32 %v474_v28, 0.0  ;;  %vm483_vm4 = vcmp.gt.f32.partialorder %v474_v28, 0.0 }
  0xf5   : > { %v478_v32 = vpop.f32.mrb[4].mxu0 }
  0xf6   : > { %v490_v33 = vmul.f32 1.442695, %v486_v30  ;;  %v479_v34 = vadd.f32 %v478_v32, %v386_v31  ;;  %v971_v35 = vpop.f32.mrb[5].mxu0 }
  0xf8   : > { %1048 = vpow2.f32 %v490_v33  ;;  %v487_v36 = vmin.f32 %v479_v34, 0.0  ;;  %vm484_vm5 = vcmp.gt.f32.partialorder %v479_v34, 0.0 }
  0xfa   : > { %v492_v37 = vmul.f32 1.442695, %v487_v36 }
  0xfc   : > { %1050 = vpow2.f32 %v492_v37 }
  0xfe   : > { %v1047_v38 = vpop.eup %1046 }
  0xff   : > { %v919_v39 = vadd.f32 -1.0, %v1047_v38 }
 0x101   : > { %v497_v42 = vsel %vm482_vm3, %v469_v22, %v919_v39 }
 0x102   : > { %v1049_v40 = vpop.eup %1048 }
 0x103   : > { %v920_v41 = vadd.f32 -1.0, %v1049_v40 }
 0x105   : > { %v498_v43 = vsel %vm483_vm4, %v474_v28, %v920_v41 }
 0x106   : > { %v1051_v44 = vpop.eup %1050  ;;  %v998_v45 = vpack.c.bf16 %v498_v43, %v497_v42 }
 0x107   : > { %v921_v46 = vadd.f32 -1.0, %v1051_v44 }
 0x108   : > { %999 = vmatprep.subr.bf16.mxu1 %v998_v45 }
 0x109   : > { %1001 = vmatpush3.bf16.msra.mxu1 %v998_v45  ;;  %v499_v47 = vsel %vm484_vm5, %v479_v34, %v921_v46 }
 0x10a   : > { %976 = vmatprep.subr.msk.mxu1 %vm398_vm1, %v499_v47 }
 0x10d   : > { %977 = vmatpush3.msk.msra.mxu1 %vm398_vm1, %v499_v47 }
 0x10e   : > { %979 = vmatmul.mubr.msk.f32.vlgmr.msra.gmra.mrb[0].mxu1 %vm388_vm2, %v501_v48 }
 0x10f   : > { %985 = vmatprep.mubr.msk.f32.mxu1 %vm624_vm6, %v610_v49 }
 0x1e1   : > { %v980_v51 = vpop.f32.mrb[0].mxu1 }
 0x1e2   : > { %v595_v53 = vadd.f32 %v980_v51, %v512_v50  ;;  %v589_v54 = vpop.f32.mrb[1].mxu1 }
 0x1e3   : > { %v590_v55 = vadd.f32 %v589_v54, %v507_v52 }
 0x1e4   : > { %v601_v56 = vmin.f32 %v595_v53, 0.0  ;;  %vm599_vm8 = vcmp.gt.f32.partialorder %v595_v53, 0.0 }
 0x1e5   : > { %v600_v57 = vmin.f32 %v590_v55, 0.0  ;;  %vm598_vm9 = vcmp.gt.f32.partialorder %v590_v55, 0.0 }
 0x1e6   : > { %v604_v58 = vmul.f32 1.442695, %v601_v56 }
 0x1e7   : > { %v602_v59 = vmul.f32 1.442695, %v600_v57 }
 0x1e8   : > { %1052 = vpow2.f32 %v604_v58 }
 0x1e9   : > { %1054 = vpow2.f32 %v602_v59 }
 0x1f2   : > { %v1053_v60 = vpop.eup %1052 }
 0x1f3   : > { %v1055_v61 = vpop.eup %1054  ;;  %v926_v62 = vadd.f32 -1.0, %v1053_v60 }
 0x1f4   : > { %v925_v63 = vadd.f32 -1.0, %v1055_v61 }
 0x1f5   : > { %v609_v0 = vsel %vm599_vm8, %v595_v53, %v926_v62 }
 0x1f6   : > { %v608_v1 = vsel %vm598_vm9, %v590_v55, %v925_v63 }
 0x1f7   : > { %v1002_v3 = vpack.c.bf16 %v609_v0, %v608_v1 }
 0x1f9   : > { %1004 = vmatprep.subr.msk.bf16.mxu1 %vm1220_vm11, %v1002_v3 }
 0x1fa   : > { %1007 = vmatpush3.bf16.msk.msra.mxu1 %vm1220_vm11, %v1002_v3 }
 0x1fd   : > { %986 = vmatmul.mubr.msk.f32.vlgmr.msra.gmra.mrb[2].mxu1 %vm624_vm6, %v611_v4 }
 0x1fe   : > { %992 = vmatprep.mubr.msk.f32.mxu1 %vm624_vm6, %v722_v5 }
 0x2d0   : > { %v987_v7 = vpop.f32.mrb[2].mxu1 }
 0x2d1   : > { %v707_v9 = vadd.f32 %v987_v7, %v622_v6  ;;  %v701_v10 = vpop.f32.mrb[3].mxu1 }
 0x2d2   : > { %v702_v11 = vadd.f32 %v701_v10, %v617_v8 }
 0x2d3   : > { %v713_v12 = vmin.f32 %v707_v9, 0.0  ;;  %vm711_vm12 = vcmp.gt.f32.partialorder %v707_v9, 0.0 }
 0x2d4   : > { %v712_v13 = vmin.f32 %v702_v11, 0.0  ;;  %vm710_vm13 = vcmp.gt.f32.partialorder %v702_v11, 0.0 }
 0x2d5   : > { %v716_v14 = vmul.f32 1.442695, %v713_v12 }
 0x2d6   : > { %v714_v15 = vmul.f32 1.442695, %v712_v13 }
 0x2d7   : > { %1056 = vpow2.f32 %v716_v14 }
 0x2d8   : > { %1058 = vpow2.f32 %v714_v15 }
 0x2e1   : > { %v1057_v16 = vpop.eup %1056 }
 0x2e2   : > { %v1059_v17 = vpop.eup %1058  ;;  %v931_v18 = vadd.f32 -1.0, %v1057_v16 }
 0x2e3   : > { %v930_v19 = vadd.f32 -1.0, %v1059_v17 }
 0x2e4   : > { %v721_v20 = vsel %vm711_vm12, %v707_v9, %v931_v18 }
 0x2e5   : > { %v720_v21 = vsel %vm710_vm13, %v702_v11, %v930_v19 }
 0x2e6   : > { %v1008_v22 = vpack.c.bf16 %v721_v20, %v720_v21 }
 0x2e8   : > { %1010 = vmatprep.subr.msk.bf16.mxu1 %vm1220_vm11, %v1008_v22 }
 0x2e9   : > { %1013 = vmatpush3.bf16.msk.msra.mxu1 %vm1220_vm11, %v1008_v22 }
 0x2ec   : > { %993 = vmatmul.mubr.msk.f32.vlgmr.msra.gmra.mrb[4].mxu1 %vm624_vm6, %v723_v23 }
 0x3bf   : > { %v994_v25 = vpop.f32.mrb[4].mxu1 }
 0x3c0   : > { %v817_v27 = vadd.f32 %v994_v25, %v734_v24  ;;  %v811_v28 = vpop.f32.mrb[5].mxu1 }
 0x3c1   : > { %v812_v29 = vadd.f32 %v811_v28, %v729_v26 }
 0x3c2   : > { %823 = vst.msk [vmem:[%s363_s22 + $0x8] sm:$0x3] %vm822_vm14, %v817_v27 }
 0x3c3   : > { %821 = vst.msk [vmem:[%s363_s22] sm:$0xff] %vm820_vm15, %v812_v29 }
 0x3c4 PF: > { %s19_s11 = sadd.s32 1, %s1082_s11   ;;  %s1269_s30 = smov %s1078_s10 }
 0x3c5   : > { %p16_p5 = scmp.ge.s32.totalorder %s19_s11, 4   ;;  %s1270_s10 = smov %s1272_s12 }
 0x3c7   :  { %18 = sbr.rel (!%p16_p5) target bundleno = 2 (0x2), region = 86 }

</bundles_post_ra>
